<compile_context>
chip_gen: v6e
topology: v6e:2x2x1
jax: 0.10.0
libtpu: 0.0.40
codegen_flags: <defaults>
</compile_context>

<pallas_src>
import functools

import jax
import jax.numpy as jnp
from jax.experimental import pallas as pl
from jax.experimental.pallas import tpu as pltpu


def _round_up(x, m):
    return ((x + m - 1) // m) * m


def fc_cls_kernel(x_ref, w1_ref, b1_ref, w2_ref, b2_ref, w3_ref, b3_ref, o_ref):
    # Cast the f32 activation tile to the MXU compute dtype in-kernel (VPU cast),
    # so the wrapper never runs a separate HBM cast pass over x.
    x = x_ref[...].astype(w1_ref.dtype)
    # fc1 + relu  (MXU matmul, f32 accumulate; bias + ReLU fused on the VPU)
    h = jnp.dot(x, w1_ref[...], preferred_element_type=jnp.float32)
    h = jnp.maximum(h + b1_ref[...], 0.0)
    # fc2 + relu
    h = jnp.dot(h.astype(w2_ref.dtype), w2_ref[...],
                preferred_element_type=jnp.float32)
    h = jnp.maximum(h + b2_ref[...], 0.0)
    # fc3 + relu  (N padded to a multiple of 128 lanes -> unmasked vst stores)
    h = jnp.dot(h.astype(w3_ref.dtype), w3_ref[...],
                preferred_element_type=jnp.float32)
    h = jnp.maximum(h + b3_ref[...], 0.0)
    o_ref[...] = h.astype(o_ref.dtype)


def prepare_fc_cls_params(params, *, compute_dtype=jnp.bfloat16):
    """One-time weight prep (hoisted out of the per-call forward):
      * weights cast to the MXU compute dtype (bf16 recommended on v5e/v6e/v7x),
      * classifier layer zero-padded to a lane-dense width (multiple of 128),
      * biases reshaped to (1, out) f32 rows for in-kernel broadcast.
    Returns (prepared_params, n_classes)."""
    w1, b1 = params["w1"], params["b1"]
    w2, b2 = params["w2"], params["b2"]
    w3, b3 = params["w3"], params["b3"]
    n_classes = w3.shape[1]
    n_pad = max(128, _round_up(n_classes, 128))
    w3p = jnp.zeros((w3.shape[0], n_pad), w3.dtype).at[:, :n_classes].set(w3)
    b3p = jnp.zeros((n_pad,), b3.dtype).at[:n_classes].set(b3)
    prepared = {
        "w1": w1.astype(compute_dtype),
        "w2": w2.astype(compute_dtype),
        "w3": w3p.astype(compute_dtype),
        "b1": b1.reshape(1, -1).astype(jnp.float32),
        "b2": b2.reshape(1, -1).astype(jnp.float32),
        "b3": b3p.reshape(1, -1).astype(jnp.float32),
    }
    return prepared, n_classes


@functools.partial(
    jax.jit, static_argnames=("n_classes", "tile_b", "out_dtype", "slice_output"))
def fc_cls_forward(x, prepared, *, n_classes, tile_b=2048,
                   out_dtype=jnp.float32, slice_output=True):
    """x: (B, 512) float32. prepared: output of prepare_fc_cls_params.

    tile_b: max batch tile (2048 good for v6e/v7x; 1024 for v5e).
    out_dtype=jnp.bfloat16 halves output writeback bytes if the consumer accepts it.
    slice_output=False returns the padded (B, n_pad) slab (consumer must ignore
    lanes >= n_classes) and skips an extra HBM pass over the output.
    """
    B, D_in = x.shape
    assert D_in == 512
    w1, b1 = prepared["w1"], prepared["b1"]
    w2, b2 = prepared["w2"], prepared["b2"]
    w3, b3 = prepared["w3"], prepared["b3"]
    n_pad = w3.shape[1]
    d_h = w1.shape[1]

    # Batch tile selection:
    #  * big tiles (default 2048 rows) amortize the ~0.35us per-grid-step overhead,
    #  * rounded to 16 sublanes (bf16 packed tile is (16,128); also a multiple of 8),
    #  * when B <= tile_b, split into two >=256-row tiles when possible so the
    #    "parallel" batch axis has >=2 grid steps and both v7x TensorCores work.
    if B <= tile_b:
        half = _round_up(pl.cdiv(B, 2), 16)
        tile_b_eff = half if half >= 256 else _round_up(B, 16)
    else:
        tile_b_eff = tile_b
    tile_b_eff = max(16, min(_round_up(tile_b_eff, 16), _round_up(B, 16)))
    grid = (pl.cdiv(B, tile_b_eff),)

    out_padded = pl.pallas_call(
        fc_cls_kernel,
        out_shape=jax.ShapeDtypeStruct((B, n_pad), out_dtype),
        grid_spec=pltpu.PrefetchScalarGridSpec(
            num_scalar_prefetch=0,
            grid=grid,
            in_specs=[
                pl.BlockSpec((tile_b_eff, 512), lambda i: (i, 0)),  # x tile (f32)
                pl.BlockSpec((512, d_h), lambda i: (0, 0)),         # w1 (VMEM-resident)
                pl.BlockSpec((1, d_h), lambda i: (0, 0)),           # b1
                pl.BlockSpec((d_h, d_h), lambda i: (0, 0)),         # w2
                pl.BlockSpec((1, d_h), lambda i: (0, 0)),           # b2
                pl.BlockSpec((d_h, n_pad), lambda i: (0, 0)),       # w3 (padded)
                pl.BlockSpec((1, n_pad), lambda i: (0, 0)),         # b3 (padded)
            ],
            out_specs=pl.BlockSpec((tile_b_eff, n_pad), lambda i: (i, 0)),
        ),
        compiler_params=pltpu.CompilerParams(
            dimension_semantics=("parallel",),      # batch axis shards across TCs (v7x)
            vmem_limit_bytes=48 * 1024 * 1024,      # headroom for 2048-row tiles
        ),
    )(x, w1, b1, w2, b2, w3, b3)

    if slice_output:
        # Padded classifier lanes are exactly 0 after ReLU; slice back to n_classes.
        return out_padded[:, :n_classes]
    return out_padded


def init_fc_cls_params(key, n_classes):
    """Deterministic init mimicking PyTorch nn.Linear default U(-1/sqrt(fan_in), +)."""
    def linear_init(k, fan_in, fan_out):
        kw, kb = jax.random.split(k)
        bound = 1.0 / jnp.sqrt(fan_in)
        # stored as (in, out) == transpose of PyTorch's (out, in)
        w = jax.random.uniform(kw, (fan_in, fan_out), jnp.float32, -bound, bound)
        b = jax.random.uniform(kb, (fan_out,), jnp.float32, -bound, bound)
        return w, b

    k1, k2, k3 = jax.random.split(key, 3)
    w1, b1 = linear_init(k1, 512, 256)
    w2, b2 = linear_init(k2, 256, 256)
    w3, b3 = linear_init(k3, 256, n_classes)
    return {"w1": w1, "b1": b1, "w2": w2, "b2": b2, "w3": w3, "b3": b3}


def fc_cls_reference(x, p):
    # NOTE: ReLU after fc3 matches the PyTorch module (unusual for a classifier
    # head, but that is what the spec does).
    h = jnp.maximum(x @ p["w1"] + p["b1"], 0.0)
    h = jnp.maximum(h @ p["w2"] + p["b2"], 0.0)
    h = jnp.maximum(h @ p["w3"] + p["b3"], 0.0)
    return h


if __name__ == "__main__":
    key = jax.random.PRNGKey(0)
    k_params, k_x = jax.random.split(key)

    n_classes = 10
    B = 64  # small demo batch; tile auto-clamps to 64 rows (one grid step)
    params = init_fc_cls_params(k_params, n_classes)
    x = jax.random.normal(k_x, (B, 512), jnp.float32)

    ref = fc_cls_reference(x, params)

    # f32 MXU path: exact-ish match against the reference.
    prep_f32, nc = prepare_fc_cls_params(params, compute_dtype=jnp.float32)
    out_f32 = jax.block_until_ready(
        fc_cls_forward(x, prep_f32, n_classes=nc))
    assert out_f32.shape == (B, n_classes)
    assert jnp.allclose(out_f32, ref, atol=1e-4, rtol=1e-4), "f32 mismatch vs reference"

    # bf16 MXU operands (default; f32 accumulate): recommended on all generations.
    prep_bf16, nc = prepare_fc_cls_params(params)  # compute_dtype=bf16
    out_bf16 = jax.block_until_ready(
        fc_cls_forward(x, prep_bf16, n_classes=nc))
    assert out_bf16.shape == (B, n_classes)
    assert jnp.allclose(out_bf16, ref, atol=5e-2, rtol=5e-2), "bf16 mismatch vs reference"

    # bf16 output + padded (un-sliced) output path: consumer ignores lanes >= n_classes.
    out_pad = jax.block_until_ready(
        fc_cls_forward(x, prep_bf16, n_classes=nc,
                       out_dtype=jnp.bfloat16, slice_output=False))
    assert out_pad.shape[0] == B and out_pad.shape[1] >= n_classes
    assert jnp.allclose(out_pad[:, :n_classes].astype(jnp.float32), ref,
                        atol=5e-2, rtol=5e-2), "bf16-out mismatch vs reference"
    assert jnp.all(out_pad[:, n_classes:] == 0), "padded lanes must be zero after ReLU"

    print("KERNEL_OK")
</pallas_src>

<mosaic_0001>
module attributes {stable_mosaic.version = 11 : i64} {
  func.func @fc_cls_kernel(%arg0: i32, %arg1: memref<64x512xf32, #tpu.memory_space<vmem>>, %arg2: memref<512x256xf32, #tpu.memory_space<vmem>>, %arg3: memref<1x256xf32, #tpu.memory_space<vmem>>, %arg4: memref<256x256xf32, #tpu.memory_space<vmem>>, %arg5: memref<1x256xf32, #tpu.memory_space<vmem>>, %arg6: memref<256x128xf32, #tpu.memory_space<vmem>>, %arg7: memref<1x128xf32, #tpu.memory_space<vmem>>, %arg8: memref<64x128xf32, #tpu.memory_space<vmem>>) attributes {dimension_semantics = [#tpu.dimension_semantics<parallel>], iteration_bounds = array<i64: 1>, scalar_prefetch = 0 : i64, scratch_operands = 0 : i64, tpu.core_type = #tpu.core_type<tc>, window_params = [{transform_indices = @transform_0, window_bounds = array<i64: 64, 512>}, {pipeline_mode = #tpu.pipeline_mode<synchronous>, transform_indices = @transform_1, window_bounds = array<i64: 512, 256>}, {pipeline_mode = #tpu.pipeline_mode<synchronous>, transform_indices = @transform_2, window_bounds = array<i64: 1, 256>}, {pipeline_mode = #tpu.pipeline_mode<synchronous>, transform_indices = @transform_3, window_bounds = array<i64: 256, 256>}, {pipeline_mode = #tpu.pipeline_mode<synchronous>, transform_indices = @transform_4, window_bounds = array<i64: 1, 256>}, {pipeline_mode = #tpu.pipeline_mode<synchronous>, transform_indices = @transform_5, window_bounds = array<i64: 256, 128>}, {pipeline_mode = #tpu.pipeline_mode<synchronous>, transform_indices = @transform_6, window_bounds = array<i64: 1, 128>}, {transform_indices = @transform_7, window_bounds = array<i64: 64, 128>}]} {
    %c0 = arith.constant 0 : index
    %c0_0 = arith.constant 0 : index
    %0 = vector.load %arg1[%c0, %c0_0] : memref<64x512xf32, #tpu.memory_space<vmem>>, vector<64x512xf32>
    %c0_1 = arith.constant 0 : index
    %c0_2 = arith.constant 0 : index
    %1 = vector.load %arg2[%c0_1, %c0_2] : memref<512x256xf32, #tpu.memory_space<vmem>>, vector<512x256xf32>
    %cst = arith.constant dense<0.000000e+00> : vector<64x256xf32>
    %2 = tpu.matmul %0, %1, %cst {dimension_numbers = #tpu.dot_dimension_numbers<[1], [0], [0], [1], [0, 0, 1, 1], [], []>} : vector<64x512xf32>, vector<512x256xf32>, vector<64x256xf32> -> vector<64x256xf32>
    %c0_3 = arith.constant 0 : index
    %c0_4 = arith.constant 0 : index
    %3 = vector.load %arg3[%c0_3, %c0_4] : memref<1x256xf32, #tpu.memory_space<vmem>>, vector<1x256xf32>
    %4 = vector.broadcast %3 : vector<1x256xf32> to vector<64x256xf32>
    %5 = arith.addf %2, %4 : vector<64x256xf32>
    %cst_5 = arith.constant 0.000000e+00 : f32
    %6 = vector.broadcast %cst_5 : f32 to vector<64x256xf32>
    %7 = arith.maximumf %5, %6 : vector<64x256xf32>
    %c0_6 = arith.constant 0 : index
    %c0_7 = arith.constant 0 : index
    %8 = vector.load %arg4[%c0_6, %c0_7] : memref<256x256xf32, #tpu.memory_space<vmem>>, vector<256x256xf32>
    %cst_8 = arith.constant dense<0.000000e+00> : vector<64x256xf32>
    %9 = tpu.matmul %7, %8, %cst_8 {dimension_numbers = #tpu.dot_dimension_numbers<[1], [0], [0], [1], [0, 0, 1, 1], [], []>} : vector<64x256xf32>, vector<256x256xf32>, vector<64x256xf32> -> vector<64x256xf32>
    %c0_9 = arith.constant 0 : index
    %c0_10 = arith.constant 0 : index
    %10 = vector.load %arg5[%c0_9, %c0_10] : memref<1x256xf32, #tpu.memory_space<vmem>>, vector<1x256xf32>
    %11 = vector.broadcast %10 : vector<1x256xf32> to vector<64x256xf32>
    %12 = arith.addf %9, %11 : vector<64x256xf32>
    %cst_11 = arith.constant 0.000000e+00 : f32
    %13 = vector.broadcast %cst_11 : f32 to vector<64x256xf32>
    %14 = arith.maximumf %12, %13 : vector<64x256xf32>
    %c0_12 = arith.constant 0 : index
    %c0_13 = arith.constant 0 : index
    %15 = vector.load %arg6[%c0_12, %c0_13] : memref<256x128xf32, #tpu.memory_space<vmem>>, vector<256x128xf32>
    %cst_14 = arith.constant dense<0.000000e+00> : vector<64x128xf32>
    %16 = tpu.matmul %14, %15, %cst_14 {dimension_numbers = #tpu.dot_dimension_numbers<[1], [0], [0], [1], [0, 0, 1, 1], [], []>} : vector<64x256xf32>, vector<256x128xf32>, vector<64x128xf32> -> vector<64x128xf32>
    %c0_15 = arith.constant 0 : index
    %c0_16 = arith.constant 0 : index
    %17 = vector.load %arg7[%c0_15, %c0_16] : memref<1x128xf32, #tpu.memory_space<vmem>>, vector<1x128xf32>
    %18 = vector.broadcast %17 : vector<1x128xf32> to vector<64x128xf32>
    %19 = arith.addf %16, %18 : vector<64x128xf32>
    %cst_17 = arith.constant 0.000000e+00 : f32
    %20 = vector.broadcast %cst_17 : f32 to vector<64x128xf32>
    %21 = arith.maximumf %19, %20 : vector<64x128xf32>
    %c0_18 = arith.constant 0 : index
    %c0_19 = arith.constant 0 : index
    %22 = vector.load %arg8[%c0_18, %c0_19] : memref<64x128xf32, #tpu.memory_space<vmem>>, vector<64x128xf32>
    tpu.vector_store %arg8[%c0_18, %c0_19], %21 {strides = array<i32>} : memref<64x128xf32, #tpu.memory_space<vmem>>, vector<64x128xf32>,
    return
  }
  func.func @transform_0(%arg0: i32) -> (i32, i32) {
    %c0_i32 = arith.constant 0 : i32
    %c0_i32_0 = arith.constant 0 : i32
    return %arg0, %c0_i32 : i32, i32
  }
  func.func @transform_1(%arg0: i32) -> (i32, i32) {
    %c0_i32 = arith.constant 0 : i32
    %c0_i32_0 = arith.constant 0 : i32
    %c0_i32_1 = arith.constant 0 : i32
    return %c0_i32, %c0_i32_0 : i32, i32
  }
  func.func @transform_2(%arg0: i32) -> (i32, i32) {
    %c0_i32 = arith.constant 0 : i32
    %c0_i32_0 = arith.constant 0 : i32
    %c0_i32_1 = arith.constant 0 : i32
    return %c0_i32, %c0_i32_0 : i32, i32
  }
  func.func @transform_3(%arg0: i32) -> (i32, i32) {
    %c0_i32 = arith.constant 0 : i32
    %c0_i32_0 = arith.constant 0 : i32
    %c0_i32_1 = arith.constant 0 : i32
    return %c0_i32, %c0_i32_0 : i32, i32
  }
  func.func @transform_4(%arg0: i32) -> (i32, i32) {
    %c0_i32 = arith.constant 0 : i32
    %c0_i32_0 = arith.constant 0 : i32
    %c0_i32_1 = arith.constant 0 : i32
    return %c0_i32, %c0_i32_0 : i32, i32
  }
  func.func @transform_5(%arg0: i32) -> (i32, i32) {
    %c0_i32 = arith.constant 0 : i32
    %c0_i32_0 = arith.constant 0 : i32
    %c0_i32_1 = arith.constant 0 : i32
    return %c0_i32, %c0_i32_0 : i32, i32
  }
  func.func @transform_6(%arg0: i32) -> (i32, i32) {
    %c0_i32 = arith.constant 0 : i32
    %c0_i32_0 = arith.constant 0 : i32
    %c0_i32_1 = arith.constant 0 : i32
    return %c0_i32, %c0_i32_0 : i32, i32
  }
  func.func @transform_7(%arg0: i32) -> (i32, i32) {
    %c0_i32 = arith.constant 0 : i32
    %c0_i32_0 = arith.constant 0 : i32
    return %arg0, %c0_i32 : i32, i32
  }
}

</mosaic_0001>

<bundles_post_ra>
// kernel: fc_cls_forward.1
= control target key start
LH: loop header
LB: loop body
LE: loop exit
PB: predicated region body
PF: predicated region fallthrough
CT: control target
= control target key end

     0   :  { %12 = vsyncpa [#allocation3], 0  ;;  %s1180_s0 = inlined_call_operand.hbm [shape: f32[64,512], index: 0, kind: input, shape index: {}]   ;;  %s1181_s1 = inlined_call_operand.hbm [shape: f32[512,256], index: 1, kind: input, shape index: {}]   ;;  %s1182_s2 = inlined_call_operand.hbm [shape: f32[1,256], index: 2, kind: input, shape index: {}]   ;;  %s1183_s3 = inlined_call_operand.hbm [shape: f32[256,256], index: 3, kind: input, shape index: {}]   ;;  %s1184_s4 = inlined_call_operand.vmem [shape: f32[1,256], index: 4, kind: input, shape index: {}]   ;;  %s1185_s5 = inlined_call_operand.hbm [shape: f32[256,128], index: 5, kind: input, shape index: {}]   ;;  %s1186_s6 = inlined_call_operand.vmem [shape: f32[1,128], index: 6, kind: input, shape index: {}]   ;;  %s1187_s7 = inlined_call_operand.vmem [shape: f32[64,128], index: 7, kind: output, shape index: {}]  }
   0x1   :  { %13 = vsyncpa [#allocation5], 0 }
   0x2   :  { %14 = vsyncpa [#allocation8], 0  ;;  %s1052_s24 = smov [#allocation4]  }
   0x3   :  { %s32_s25 = sshll.u32 %s1052_s24, 4  ;;  %s33_s25 = int_to_ptr.vmem [resolvable:$true] %s32_s25 }
   0x4   :  { %s954_s26 = scalar_lea.vmem %s33_s25, 16384  ;;  %p959_p1 = scmp.lt.s32.totalorder %s33_s25, %s33_s25 }
   0x5   :  { %p955_p0 = scmp.ne.s32.totalorder %s33_s25, %s954_s26  ;;  %p960_p2 = scmp.lt.s32.totalorder %s954_s26, %s954_s26 }
   0x7   :  { %p961_p3 = por %p960_p2, %p959_p1 }
   0x9   :  { %p962_p4 = pnand %p961_p3, %p955_p0 }
   0xb   :  { %965 = shalt.err (!%p962_p4)
}
   0xc   :  { %s1053_s27 = smov 256   ;;  %s1054_s28 = smov 16  }
   0xd   :  { %38 = dma.hbm_to_vmem [thread:$0]  %s1181_s1, 16384, %s33_s25, [#allocation5], %s1053_s27, %s1053_s27, %s1054_s28  }
   0xe   :  { %s1055_s8 = smov [#allocation7]   ;;  %s1056_s10 = smov [#allocation2]  }
   0xf   :  { %s54_s9 = sshll.u32 %s1055_s8, 4  ;;  %s20_s11 = sshll.u32 %s1056_s10, 4  ;;  %s55_s9 = int_to_ptr.vmem [resolvable:$true] %s54_s9  ;;  %s21_s11 = int_to_ptr.vmem [resolvable:$true] %s20_s11 }
  0x10   :  { %s974_s12 = scalar_lea.vmem %s55_s9, 8192  ;;  %p979_p6 = scmp.lt.s32.totalorder %s55_s9, %s55_s9 }
  0x11   :  { %p975_p5 = scmp.ne.s32.totalorder %s55_s9, %s974_s12  ;;  %p980_p7 = scmp.lt.s32.totalorder %s974_s12, %s974_s12 }
  0x13   :  { %p981_p8 = por %p980_p7, %p979_p6 }
  0x15   :  { %p982_p9 = pnand %p981_p8, %p975_p5 }
  0x17   :  { %985 = shalt.err (!%p982_p9)
}
  0x18   :  { %60 = dma.hbm_to_vmem [thread:$0]  %s1183_s3, 8192, %s55_s9, [#allocation8], %s1053_s27, %s1053_s27, %s1054_s28  }
  0x19   :  { %s994_s15 = scalar_lea.vmem %s21_s11, 4096  ;;  %p999_p11 = scmp.lt.s32.totalorder %s21_s11, %s21_s11 }
  0x1a   :  { %p995_p10 = scmp.ne.s32.totalorder %s21_s11, %s994_s15  ;;  %p1000_p12 = scmp.lt.s32.totalorder %s994_s15, %s994_s15 }
  0x1c   :  { %p1001_p13 = por %p1000_p12, %p999_p11 }
  0x1e   :  { %p1002_p0 = pnand %p1001_p13, %p995_p10 }
  0x20   :  { %1005 = shalt.err (!%p1002_p0)
}
  0x21   :  { %s1057_s1 = smov 512   ;;  %s1058_s16 = smov 32  }
  0x22   :  { %26 = dma.hbm_to_vmem [thread:$0]  %s1180_s0, 4096, %s21_s11, [#allocation3], %s1057_s1, %s1057_s1, %s1058_s16  }
  0x23   :  { %s1059_s19 = smov [#allocation6]   ;;  %s1060_s21 = smov [#allocation9]  }
  0x24   :  { %s45_s20 = sshll.u32 %s1059_s19, 4  ;;  %s68_s22 = sshll.u32 %s1060_s21, 4  ;;  %s46_s20 = int_to_ptr.vmem [resolvable:$true] %s45_s20  ;;  %s69_s22 = int_to_ptr.vmem [resolvable:$true] %s68_s22 }
  0x25   :  { %s1014_s3 = scalar_lea.vmem %s46_s20, 32  ;;  %p1019_p2 = scmp.lt.s32.totalorder %s46_s20, %s46_s20 }
  0x26   :  { %p1015_p1 = scmp.ne.s32.totalorder %s46_s20, %s1014_s3  ;;  %p1020_p3 = scmp.lt.s32.totalorder %s1014_s3, %s1014_s3 }
  0x28   :  { %p1021_p4 = por %p1020_p3, %p1019_p2 }
  0x2a   :  { %p1022_p5 = pnand %p1021_p4, %p1015_p1 }
  0x2c   :  { %1025 = shalt.err (!%p1022_p5)
}
  0x2d   :  { %48 = dma.hbm_to_vmem [thread:$0]  %s1182_s2, 32, %s46_s20, [#allocation5]  }
  0x2e   :  { %s1034_s25 = scalar_lea.vmem %s69_s22, 4096  ;;  %p1039_p7 = scmp.lt.s32.totalorder %s69_s22, %s69_s22 }
  0x2f   :  { %p1035_p6 = scmp.ne.s32.totalorder %s69_s22, %s1034_s25  ;;  %p1040_p8 = scmp.lt.s32.totalorder %s1034_s25, %s1034_s25 }
  0x31   :  { %p1041_p9 = por %p1040_p8, %p1039_p7 }
  0x33   :  { %p1042_p10 = pnand %p1041_p9, %p1035_p6 }
  0x35   :  { %1045 = shalt.err (!%p1042_p10)
}
  0x36   :  { %s1061_s0 = smov 128   ;;  %s1062_s26 = smov 8  }
  0x37   :  { %74 = dma.hbm_to_vmem [thread:$0]  %s1185_s5, 4096, %s69_s22, [#allocation8], %s1061_s0, %s1061_s0, %s1062_s26  }
  0x38   :  { %1046 = dma.done.wait [#allocation3], 4096  }
  0x39   :  { %1047 = vsyncadd [#allocation3], 4294963200 }
  0x3a   :  { %1048 = dma.done.wait [#allocation5], 16416  }
  0x3b   :  { %1049 = vsyncadd [#allocation5], 4294950880 }
  0x3c   :  { %1050 = dma.done.wait [#allocation8], 12288  }
  0x3d   :  { %1051 = vsyncadd [#allocation8], 4294955008  ;;  %v155_v0 = vld [vmem:[#allocation4 + $0xf8] sm:$0xff]  ;;  %v154_v2 = vld [vmem:[#allocation4 + $0xf0] sm:$0xff] }
  0x3e   :  { %v219_v1 = vld [vmem:[#allocation4 + $0x2f8] sm:$0xff]  ;;  %264 = vmatprep.subr.mxu0 %v155_v0  ;;  %v218_v3 = vld [vmem:[#allocation4 + $0x2f0] sm:$0xff]  ;;  %v153_v4 = vld [vmem:[#allocation4 + $0xe8] sm:$0xff] }
  0x3f   :  { %377 = vmatprep.subr.mxu1 %v219_v1  ;;  %v217_v5 = vld [vmem:[#allocation4 + $0x2e8] sm:$0xff]  ;;  %265 = vmatpush1.msra.mxu0 %v154_v2  ;;  %v152_v6 = vld [vmem:[#allocation4 + $0xe0] sm:$0xff]  ;;  %v151_v8 = vld [vmem:[#allocation4 + $0xd8] sm:$0xff] }
  0x40   :  { %378 = vmatpush1.msra.mxu1 %v218_v3  ;;  %v216_v7 = vld [vmem:[#allocation4 + $0x2e0] sm:$0xff]  ;;  %266 = vmatprep.subr.mxu0 %v153_v4  ;;  %v215_v9 = vld [vmem:[#allocation4 + $0x2d8] sm:$0xff]  ;;  %v150_v10 = vld [vmem:[#allocation4 + $0xd0] sm:$0xff] }
  0x41   :  { %379 = vmatprep.subr.mxu1 %v217_v5  ;;  %v214_v11 = vld [vmem:[#allocation4 + $0x2d0] sm:$0xff]  ;;  %267 = vmatpush1.msra.mxu0 %v152_v6  ;;  %v149_v12 = vld [vmem:[#allocation4 + $0xc8] sm:$0xff]  ;;  %v148_v14 = vld [vmem:[#allocation4 + $0xc0] sm:$0xff] }
  0x42   :  { %380 = vmatpush1.msra.mxu1 %v216_v7  ;;  %v213_v13 = vld [vmem:[#allocation4 + $0x2c8] sm:$0xff]  ;;  %268 = vmatprep.subr.mxu0 %v151_v8  ;;  %v212_v15 = vld [vmem:[#allocation4 + $0x2c0] sm:$0xff]  ;;  %v147_v16 = vld [vmem:[#allocation4 + $0xb8] sm:$0xff] }
  0x43   :  { %381 = vmatprep.subr.mxu1 %v215_v9  ;;  %269 = vmatpush1.msra.mxu0 %v150_v10  ;;  %v211_v17 = vld [vmem:[#allocation4 + $0x2b8] sm:$0xff]  ;;  %v146_v18 = vld [vmem:[#allocation4 + $0xb0] sm:$0xff]  ;;  %v145_v20 = vld [vmem:[#allocation4 + $0xa8] sm:$0xff] }
  0x44   :  { %382 = vmatpush1.msra.mxu1 %v214_v11  ;;  %270 = vmatprep.subr.mxu0 %v149_v12  ;;  %v210_v19 = vld [vmem:[#allocation4 + $0x2b0] sm:$0xff]  ;;  %v209_v21 = vld [vmem:[#allocation4 + $0x2a8] sm:$0xff]  ;;  %v144_v22 = vld [vmem:[#allocation4 + $0xa0] sm:$0xff] }
  0x45   :  { %383 = vmatprep.subr.mxu1 %v213_v13  ;;  %271 = vmatpush1.msra.mxu0 %v148_v14  ;;  %v208_v23 = vld [vmem:[#allocation4 + $0x2a0] sm:$0xff]  ;;  %v143_v24 = vld [vmem:[#allocation4 + $0x98] sm:$0xff]  ;;  %v142_v26 = vld [vmem:[#allocation4 + $0x90] sm:$0xff] }
  0x46   :  { %384 = vmatpush1.msra.mxu1 %v212_v15  ;;  %272 = vmatprep.subr.mxu0 %v147_v16  ;;  %v207_v25 = vld [vmem:[#allocation4 + $0x298] sm:$0xff]  ;;  %v206_v27 = vld [vmem:[#allocation4 + $0x290] sm:$0xff]  ;;  %v141_v28 = vld [vmem:[#allocation4 + $0x88] sm:$0xff] }
  0x47   :  { %385 = vmatprep.subr.mxu1 %v211_v17  ;;  %273 = vmatpush1.msra.mxu0 %v146_v18  ;;  %v205_v29 = vld [vmem:[#allocation4 + $0x288] sm:$0xff]  ;;  %v140_v30 = vld [vmem:[#allocation4 + $0x80] sm:$0xff]  ;;  %v139_v32 = vld [vmem:[#allocation4 + $0x78] sm:$0xff] }
  0x48   :  { %386 = vmatpush1.msra.mxu1 %v210_v19  ;;  %274 = vmatprep.subr.mxu0 %v145_v20  ;;  %v204_v31 = vld [vmem:[#allocation4 + $0x280] sm:$0xff]  ;;  %v203_v33 = vld [vmem:[#allocation4 + $0x278] sm:$0xff]  ;;  %v138_v34 = vld [vmem:[#allocation4 + $0x70] sm:$0xff] }
  0x49   :  { %387 = vmatprep.subr.mxu1 %v209_v21  ;;  %275 = vmatpush1.msra.mxu0 %v144_v22  ;;  %v202_v35 = vld [vmem:[#allocation4 + $0x270] sm:$0xff]  ;;  %v137_v36 = vld [vmem:[#allocation4 + $0x68] sm:$0xff]  ;;  %v136_v38 = vld [vmem:[#allocation4 + $0x60] sm:$0xff] }
  0x4a   :  { %388 = vmatpush1.msra.mxu1 %v208_v23  ;;  %276 = vmatprep.subr.mxu0 %v143_v24  ;;  %v201_v37 = vld [vmem:[#allocation4 + $0x268] sm:$0xff]  ;;  %v200_v39 = vld [vmem:[#allocation4 + $0x260] sm:$0xff]  ;;  %v135_v40 = vld [vmem:[#allocation4 + $0x58] sm:$0xff] }
  0x4b   :  { %389 = vmatprep.subr.mxu1 %v207_v25  ;;  %277 = vmatpush1.msra.mxu0 %v142_v26  ;;  %v199_v41 = vld [vmem:[#allocation4 + $0x258] sm:$0xff]  ;;  %v134_v42 = vld [vmem:[#allocation4 + $0x50] sm:$0xff]  ;;  %v133_v44 = vld [vmem:[#allocation4 + $0x48] sm:$0xff] }
  0x4c   :  { %390 = vmatpush1.msra.mxu1 %v206_v27  ;;  %278 = vmatprep.subr.mxu0 %v141_v28  ;;  %v198_v43 = vld [vmem:[#allocation4 + $0x250] sm:$0xff]  ;;  %v197_v45 = vld [vmem:[#allocation4 + $0x248] sm:$0xff]  ;;  %v132_v46 = vld [vmem:[#allocation4 + $0x40] sm:$0xff] }
  0x4d   :  { %391 = vmatprep.subr.mxu1 %v205_v29  ;;  %279 = vmatpush1.msra.mxu0 %v140_v30  ;;  %v196_v47 = vld [vmem:[#allocation4 + $0x240] sm:$0xff]  ;;  %v131_v48 = vld [vmem:[#allocation4 + $0x38] sm:$0xff]  ;;  %v130_v50 = vld [vmem:[#allocation4 + $0x30] sm:$0xff] }
  0x4e   :  { %392 = vmatpush1.msra.mxu1 %v204_v31  ;;  %280 = vmatprep.subr.mxu0 %v139_v32  ;;  %v195_v49 = vld [vmem:[#allocation4 + $0x238] sm:$0xff]  ;;  %v194_v51 = vld [vmem:[#allocation4 + $0x230] sm:$0xff]  ;;  %v129_v52 = vld [vmem:[#allocation4 + $0x28] sm:$0xff] }
  0x4f   :  { %393 = vmatprep.subr.mxu1 %v203_v33  ;;  %281 = vmatpush1.msra.mxu0 %v138_v34  ;;  %v193_v53 = vld [vmem:[#allocation4 + $0x228] sm:$0xff]  ;;  %v128_v54 = vld [vmem:[#allocation4 + $0x20] sm:$0xff]  ;;  %v127_v56 = vld [vmem:[#allocation4 + $0x18] sm:$0xff] }
  0x50   :  { %394 = vmatpush1.msra.mxu1 %v202_v35  ;;  %282 = vmatprep.subr.mxu0 %v137_v36  ;;  %v192_v55 = vld [vmem:[#allocation4 + $0x220] sm:$0xff]  ;;  %v191_v57 = vld [vmem:[#allocation4 + $0x218] sm:$0xff]  ;;  %v126_v58 = vld [vmem:[#allocation4 + $0x10] sm:$0xff] }
  0x51   :  { %395 = vmatprep.subr.mxu1 %v201_v37  ;;  %283 = vmatpush1.msra.mxu0 %v136_v38  ;;  %v190_v59 = vld [vmem:[#allocation4 + $0x210] sm:$0xff]  ;;  %v125_v60 = vld [vmem:[#allocation4 + $0x8] sm:$0xff]  ;;  %v124_v62 = vld [vmem:[#allocation4] sm:$0xff] }
  0x52   :  { %396 = vmatpush1.msra.mxu1 %v200_v39  ;;  %284 = vmatprep.subr.mxu0 %v135_v40  ;;  %v189_v61 = vld [vmem:[#allocation4 + $0x208] sm:$0xff]  ;;  %v188_v63 = vld [vmem:[#allocation4 + $0x200] sm:$0xff]  ;;  %v187_v0 = vld [vmem:[#allocation4 + $0x1f8] sm:$0xff] }
  0x53   :  { %397 = vmatprep.subr.mxu1 %v199_v41  ;;  %285 = vmatpush1.msra.mxu0 %v134_v42  ;;  %v251_v1 = vld [vmem:[#allocation4 + $0x3f8] sm:$0xff]  ;;  %v186_v2 = vld [vmem:[#allocation4 + $0x1f0] sm:$0xff]  ;;  %v185_v4 = vld [vmem:[#allocation4 + $0x1e8] sm:$0xff] }
  0x54   :  { %398 = vmatpush1.msra.mxu1 %v198_v43  ;;  %286 = vmatprep.subr.mxu0 %v133_v44  ;;  %v250_v3 = vld [vmem:[#allocation4 + $0x3f0] sm:$0xff]  ;;  %v249_v5 = vld [vmem:[#allocation4 + $0x3e8] sm:$0xff]  ;;  %v184_v6 = vld [vmem:[#allocation4 + $0x1e0] sm:$0xff] }
  0x55   :  { %399 = vmatprep.subr.mxu1 %v197_v45  ;;  %287 = vmatpush1.msra.mxu0 %v132_v46  ;;  %v248_v7 = vld [vmem:[#allocation4 + $0x3e0] sm:$0xff]  ;;  %v183_v8 = vld [vmem:[#allocation4 + $0x1d8] sm:$0xff]  ;;  %v182_v10 = vld [vmem:[#allocation4 + $0x1d0] sm:$0xff] }
  0x56   :  { %400 = vmatpush1.msra.mxu1 %v196_v47  ;;  %288 = vmatprep.subr.mxu0 %v131_v48  ;;  %v247_v9 = vld [vmem:[#allocation4 + $0x3d8] sm:$0xff]  ;;  %v246_v11 = vld [vmem:[#allocation4 + $0x3d0] sm:$0xff]  ;;  %v181_v12 = vld [vmem:[#allocation4 + $0x1c8] sm:$0xff] }
  0x57   :  { %401 = vmatprep.subr.mxu1 %v195_v49  ;;  %289 = vmatpush1.msra.mxu0 %v130_v50  ;;  %v245_v13 = vld [vmem:[#allocation4 + $0x3c8] sm:$0xff]  ;;  %v180_v14 = vld [vmem:[#allocation4 + $0x1c0] sm:$0xff]  ;;  %v179_v16 = vld [vmem:[#allocation4 + $0x1b8] sm:$0xff] }
  0x58   :  { %402 = vmatpush1.msra.mxu1 %v194_v51  ;;  %290 = vmatprep.subr.mxu0 %v129_v52  ;;  %v244_v15 = vld [vmem:[#allocation4 + $0x3c0] sm:$0xff]  ;;  %v243_v17 = vld [vmem:[#allocation4 + $0x3b8] sm:$0xff]  ;;  %v178_v18 = vld [vmem:[#allocation4 + $0x1b0] sm:$0xff] }
  0x59   :  { %403 = vmatprep.subr.mxu1 %v193_v53  ;;  %291 = vmatpush1.msra.mxu0 %v128_v54  ;;  %v242_v19 = vld [vmem:[#allocation4 + $0x3b0] sm:$0xff]  ;;  %v177_v20 = vld [vmem:[#allocation4 + $0x1a8] sm:$0xff]  ;;  %v176_v22 = vld [vmem:[#allocation4 + $0x1a0] sm:$0xff] }
  0x5a   :  { %404 = vmatpush1.msra.mxu1 %v192_v55  ;;  %292 = vmatprep.subr.mxu0 %v127_v56  ;;  %v241_v21 = vld [vmem:[#allocation4 + $0x3a8] sm:$0xff]  ;;  %v240_v23 = vld [vmem:[#allocation4 + $0x3a0] sm:$0xff]  ;;  %v175_v24 = vld [vmem:[#allocation4 + $0x198] sm:$0xff] }
  0x5b   :  { %405 = vmatprep.subr.mxu1 %v191_v57  ;;  %293 = vmatpush1.msra.mxu0 %v126_v58  ;;  %v239_v25 = vld [vmem:[#allocation4 + $0x398] sm:$0xff]  ;;  %v174_v26 = vld [vmem:[#allocation4 + $0x190] sm:$0xff]  ;;  %v173_v28 = vld [vmem:[#allocation4 + $0x188] sm:$0xff] }
  0x5c   :  { %406 = vmatpush1.msra.mxu1 %v190_v59  ;;  %294 = vmatprep.subr.mxu0 %v125_v60  ;;  %v238_v27 = vld [vmem:[#allocation4 + $0x390] sm:$0xff]  ;;  %v237_v29 = vld [vmem:[#allocation4 + $0x388] sm:$0xff]  ;;  %v172_v30 = vld [vmem:[#allocation4 + $0x180] sm:$0xff] }
  0x5d   :  { %407 = vmatprep.subr.mxu1 %v189_v61  ;;  %295 = vmatpush1.msra.mxu0 %v124_v62  ;;  %v236_v31 = vld [vmem:[#allocation4 + $0x380] sm:$0xff]  ;;  %v171_v32 = vld [vmem:[#allocation4 + $0x178] sm:$0xff]  ;;  %v170_v34 = vld [vmem:[#allocation4 + $0x170] sm:$0xff] }
  0x5e   :  { %408 = vmatpush1.msra.mxu1 %v188_v63  ;;  %296 = vmatprep.subr.mxu0 %v187_v0  ;;  %v235_v33 = vld [vmem:[#allocation4 + $0x378] sm:$0xff]  ;;  %v234_v35 = vld [vmem:[#allocation4 + $0x370] sm:$0xff]  ;;  %v169_v36 = vld [vmem:[#allocation4 + $0x168] sm:$0xff] }
  0x5f   :  { %409 = vmatprep.subr.mxu1 %v251_v1  ;;  %297 = vmatpush2.msra.mxu0 %v186_v2  ;;  %v233_v37 = vld [vmem:[#allocation4 + $0x368] sm:$0xff]  ;;  %v168_v38 = vld [vmem:[#allocation4 + $0x160] sm:$0xff]  ;;  %v167_v40 = vld [vmem:[#allocation4 + $0x158] sm:$0xff] }
  0x60   :  { %410 = vmatpush2.msra.mxu1 %v250_v3  ;;  %298 = vmatprep.subr.mxu0 %v185_v4  ;;  %v232_v39 = vld [vmem:[#allocation4 + $0x360] sm:$0xff]  ;;  %v231_v41 = vld [vmem:[#allocation4 + $0x358] sm:$0xff]  ;;  %v166_v42 = vld [vmem:[#allocation4 + $0x150] sm:$0xff] }
  0x61   :  { %411 = vmatprep.subr.mxu1 %v249_v5  ;;  %299 = vmatpush2.msra.mxu0 %v184_v6  ;;  %v230_v43 = vld [vmem:[#allocation4 + $0x350] sm:$0xff]  ;;  %v165_v44 = vld [vmem:[#allocation4 + $0x148] sm:$0xff]  ;;  %v164_v46 = vld [vmem:[#allocation4 + $0x140] sm:$0xff] }
  0x62   :  { %412 = vmatpush2.msra.mxu1 %v248_v7  ;;  %300 = vmatprep.subr.mxu0 %v183_v8  ;;  %v229_v45 = vld [vmem:[#allocation4 + $0x348] sm:$0xff]  ;;  %v228_v47 = vld [vmem:[#allocation4 + $0x340] sm:$0xff]  ;;  %v163_v48 = vld [vmem:[#allocation4 + $0x138] sm:$0xff] }
  0x63   :  { %413 = vmatprep.subr.mxu1 %v247_v9  ;;  %301 = vmatpush2.msra.mxu0 %v182_v10  ;;  %v227_v49 = vld [vmem:[#allocation4 + $0x338] sm:$0xff]  ;;  %v162_v50 = vld [vmem:[#allocation4 + $0x130] sm:$0xff]  ;;  %v161_v52 = vld [vmem:[#allocation4 + $0x128] sm:$0xff] }
  0x64   :  { %414 = vmatpush2.msra.mxu1 %v246_v11  ;;  %302 = vmatprep.subr.mxu0 %v181_v12  ;;  %v226_v51 = vld [vmem:[#allocation4 + $0x330] sm:$0xff]  ;;  %v225_v53 = vld [vmem:[#allocation4 + $0x328] sm:$0xff]  ;;  %v160_v54 = vld [vmem:[#allocation4 + $0x120] sm:$0xff] }
  0x65   :  { %415 = vmatprep.subr.mxu1 %v245_v13  ;;  %303 = vmatpush2.msra.mxu0 %v180_v14  ;;  %v224_v55 = vld [vmem:[#allocation4 + $0x320] sm:$0xff]  ;;  %v159_v56 = vld [vmem:[#allocation4 + $0x118] sm:$0xff]  ;;  %v158_v58 = vld [vmem:[#allocation4 + $0x110] sm:$0xff] }
  0x66   :  { %416 = vmatpush2.msra.mxu1 %v244_v15  ;;  %304 = vmatprep.subr.mxu0 %v179_v16  ;;  %v223_v57 = vld [vmem:[#allocation4 + $0x318] sm:$0xff]  ;;  %v222_v59 = vld [vmem:[#allocation4 + $0x310] sm:$0xff]  ;;  %v157_v60 = vld [vmem:[#allocation4 + $0x108] sm:$0xff] }
  0x67   :  { %417 = vmatprep.subr.mxu1 %v243_v17  ;;  %305 = vmatpush2.msra.mxu0 %v178_v18  ;;  %v221_v61 = vld [vmem:[#allocation4 + $0x308] sm:$0xff]  ;;  %v156_v62 = vld [vmem:[#allocation4 + $0x100] sm:$0xff]  ;;  %v95_v1 = vld [vmem:[#allocation2 + $0x18] sm:$0xff] }
  0x68   :  { %418 = vmatpush2.msra.mxu1 %v242_v19  ;;  %306 = vmatprep.subr.mxu0 %v177_v20  ;;  %v93_v63 = vld [vmem:[#allocation2 + $0x8] sm:$0xff]  ;;  %v220_v0 = vld [vmem:[#allocation4 + $0x300] sm:$0xff]  ;;  %v94_v3 = vld [vmem:[#allocation2 + $0x10] sm:$0xff] }
  0x69   :  { %419 = vmatprep.subr.mxu1 %v241_v21  ;;  %307 = vmatpush2.msra.mxu0 %v176_v22  ;;  %v92_v2 = vld [vmem:[#allocation2] sm:$0xff]  ;;  %v97_v4 = vld [vmem:[#allocation2 + $0x28] sm:$0xff]  ;;  %v99_v5 = vld [vmem:[#allocation2 + $0x38] sm:$0xff] }
  0x6a   :  { %420 = vmatpush2.msra.mxu1 %v240_v23  ;;  %308 = vmatprep.subr.mxu0 %v175_v24  ;;  %v537_v6 = vld [vmem:[#allocation7 + $0xf8] sm:$0xff]  ;;  %v536_v7 = vld [vmem:[#allocation7 + $0xf0] sm:$0xff]  ;;  %v101_v10 = vld [vmem:[#allocation2 + $0x48] sm:$0xff] }
  0x6b   :  { %421 = vmatprep.subr.mxu1 %v239_v25  ;;  %309 = vmatpush2.msra.mxu0 %v174_v26  ;;  %v96_v8 = vld [vmem:[#allocation2 + $0x20] sm:$0xff]  ;;  %v98_v9 = vld [vmem:[#allocation2 + $0x30] sm:$0xff]  ;;  %v103_v11 = vld [vmem:[#allocation2 + $0x58] sm:$0xff] }
  0x6c   :  { %422 = vmatpush2.msra.mxu1 %v238_v27  ;;  %310 = vmatprep.subr.mxu0 %v173_v28  ;;  %v535_v12 = vld [vmem:[#allocation7 + $0xe8] sm:$0xff]  ;;  %v534_v13 = vld [vmem:[#allocation7 + $0xe0] sm:$0xff]  ;;  %v107_v17 = vld [vmem:[#allocation2 + $0x78] sm:$0xff] }
  0x6d   :  { %423 = vmatprep.subr.mxu1 %v237_v29  ;;  %311 = vmatpush2.msra.mxu0 %v172_v30  ;;  %v100_v14 = vld [vmem:[#allocation2 + $0x40] sm:$0xff]  ;;  %v102_v15 = vld [vmem:[#allocation2 + $0x50] sm:$0xff]  ;;  %v105_v16 = vld [vmem:[#allocation2 + $0x68] sm:$0xff] }
  0x6e   :  { %424 = vmatpush2.msra.mxu1 %v236_v31  ;;  %312 = vmatprep.subr.mxu0 %v171_v32  ;;  %v533_v18 = vld [vmem:[#allocation7 + $0xd8] sm:$0xff]  ;;  %v532_v19 = vld [vmem:[#allocation7 + $0xd0] sm:$0xff]  ;;  %v109_v22 = vld [vmem:[#allocation2 + $0x88] sm:$0xff] }
  0x6f   :  { %425 = vmatprep.subr.mxu1 %v235_v33  ;;  %313 = vmatpush2.msra.mxu0 %v170_v34  ;;  %v104_v20 = vld [vmem:[#allocation2 + $0x60] sm:$0xff]  ;;  %v106_v21 = vld [vmem:[#allocation2 + $0x70] sm:$0xff]  ;;  %v111_v23 = vld [vmem:[#allocation2 + $0x98] sm:$0xff] }
  0x70   :  { %426 = vmatpush2.msra.mxu1 %v234_v35  ;;  %314 = vmatprep.subr.mxu0 %v169_v36  ;;  %v531_v24 = vld [vmem:[#allocation7 + $0xc8] sm:$0xff]  ;;  %v530_v25 = vld [vmem:[#allocation7 + $0xc0] sm:$0xff]  ;;  %v115_v29 = vld [vmem:[#allocation2 + $0xb8] sm:$0xff] }
  0x71   :  { %427 = vmatprep.subr.mxu1 %v233_v37  ;;  %315 = vmatpush2.msra.mxu0 %v168_v38  ;;  %v108_v26 = vld [vmem:[#allocation2 + $0x80] sm:$0xff]  ;;  %v110_v27 = vld [vmem:[#allocation2 + $0x90] sm:$0xff]  ;;  %v113_v28 = vld [vmem:[#allocation2 + $0xa8] sm:$0xff] }
  0x72   :  { %428 = vmatpush2.msra.mxu1 %v232_v39  ;;  %316 = vmatprep.subr.mxu0 %v167_v40  ;;  %v529_v30 = vld [vmem:[#allocation7 + $0xb8] sm:$0xff]  ;;  %v528_v31 = vld [vmem:[#allocation7 + $0xb0] sm:$0xff]  ;;  %v117_v34 = vld [vmem:[#allocation2 + $0xc8] sm:$0xff] }
  0x73   :  { %429 = vmatprep.subr.mxu1 %v231_v41  ;;  %317 = vmatpush2.msra.mxu0 %v166_v42  ;;  %v112_v32 = vld [vmem:[#allocation2 + $0xa0] sm:$0xff]  ;;  %v114_v33 = vld [vmem:[#allocation2 + $0xb0] sm:$0xff]  ;;  %v119_v35 = vld [vmem:[#allocation2 + $0xd8] sm:$0xff] }
  0x74   :  { %430 = vmatpush2.msra.mxu1 %v230_v43  ;;  %318 = vmatprep.subr.mxu0 %v165_v44  ;;  %v527_v36 = vld [vmem:[#allocation7 + $0xa8] sm:$0xff]  ;;  %v526_v37 = vld [vmem:[#allocation7 + $0xa0] sm:$0xff]  ;;  %v123_v41 = vld [vmem:[#allocation2 + $0xf8] sm:$0xff] }
  0x75   :  { %431 = vmatprep.subr.mxu1 %v229_v45  ;;  %319 = vmatpush2.msra.mxu0 %v164_v46  ;;  %v116_v38 = vld [vmem:[#allocation2 + $0xc0] sm:$0xff]  ;;  %v118_v39 = vld [vmem:[#allocation2 + $0xd0] sm:$0xff]  ;;  %v121_v40 = vld [vmem:[#allocation2 + $0xe8] sm:$0xff] }
  0x76   :  { %432 = vmatpush2.msra.mxu1 %v228_v47  ;;  %320 = vmatprep.subr.mxu0 %v163_v48  ;;  %v525_v42 = vld [vmem:[#allocation7 + $0x98] sm:$0xff]  ;;  %v524_v43 = vld [vmem:[#allocation7 + $0x90] sm:$0xff]  ;;  %v523_v46 = vld [vmem:[#allocation7 + $0x88] sm:$0xff] }
  0x77   :  { %433 = vmatprep.subr.mxu1 %v227_v49  ;;  %321 = vmatpush2.msra.mxu0 %v162_v50  ;;  %v120_v44 = vld [vmem:[#allocation2 + $0xe0] sm:$0xff]  ;;  %v122_v45 = vld [vmem:[#allocation2 + $0xf0] sm:$0xff] }
  0x78   :  { %434 = vmatpush2.msra.mxu1 %v226_v51  ;;  %322 = vmatprep.subr.mxu0 %v161_v52  ;;  %v522_v47 = vld [vmem:[#allocation7 + $0x80] sm:$0xff]  ;;  %v521_v48 = vld [vmem:[#allocation7 + $0x78] sm:$0xff]  ;;  %v520_v49 = vld [vmem:[#allocation7 + $0x70] sm:$0xff] }
  0x79   :  { %435 = vmatprep.subr.mxu1 %v225_v53  ;;  %323 = vmatpush2.msra.mxu0 %v160_v54  ;;  %v519_v50 = vld [vmem:[#allocation7 + $0x68] sm:$0xff]  ;;  %v518_v51 = vld [vmem:[#allocation7 + $0x60] sm:$0xff]  ;;  %v517_v52 = vld [vmem:[#allocation7 + $0x58] sm:$0xff] }
  0x7a   :  { %436 = vmatpush2.msra.mxu1 %v224_v55  ;;  %324 = vmatprep.subr.mxu0 %v159_v56  ;;  %v516_v53 = vld [vmem:[#allocation7 + $0x50] sm:$0xff]  ;;  %v515_v54 = vld [vmem:[#allocation7 + $0x48] sm:$0xff]  ;;  %v514_v55 = vld [vmem:[#allocation7 + $0x40] sm:$0xff] }
  0x7b   :  { %437 = vmatprep.subr.mxu1 %v223_v57  ;;  %325 = vmatpush2.msra.mxu0 %v158_v58  ;;  %v513_v56 = vld [vmem:[#allocation7 + $0x38] sm:$0xff]  ;;  %v512_v57 = vld [vmem:[#allocation7 + $0x30] sm:$0xff]  ;;  %v511_v58 = vld [vmem:[#allocation7 + $0x28] sm:$0xff] }
  0x7c   :  { %438 = vmatpush2.msra.mxu1 %v222_v59  ;;  %326 = vmatprep.subr.mxu0 %v157_v60  ;;  %v510_v59 = vld [vmem:[#allocation7 + $0x20] sm:$0xff]  ;;  %v509_v60 = vld [vmem:[#allocation7 + $0x18] sm:$0xff] }
  0x7d   :  { %439 = vmatprep.subr.mxu1 %v221_v61  ;;  %327 = vmatpush2.msra.mxu0 %v156_v62  ;;  %v508_v61 = vld [vmem:[#allocation7 + $0x10] sm:$0xff]  ;;  %v507_v62 = vld [vmem:[#allocation7 + $0x8] sm:$0xff] }
  0x7e   :  { %328 = vmatprep.mubr.f32.mxu0 %v93_v63  ;;  %440 = vmatpush2.msra.mxu1 %v220_v0  ;;  %v506_v63 = vld [vmem:[#allocation7] sm:$0xff]  ;;  %v569_v0 = vld [vmem:[#allocation7 + $0x1f8] sm:$0xff] }
  0x7f   :  { %441 = vmatprep.mubr.f32.mxu1 %v95_v1  ;;  %329 = vmatmul.mubr.f32.vlgmr.msra.gmra.mxu0 %v92_v2  ;;  %v568_v1 = vld [vmem:[#allocation7 + $0x1f0] sm:$0xff]  ;;  %v567_v2 = vld [vmem:[#allocation7 + $0x1e8] sm:$0xff] }
  0x80   :  { %442 = vmatmul.mubr.f32.vlgmr.msra.gmra.mxu1 %v94_v3  ;;  %334 = vmatprep.mubr.f32.mxu0 %v97_v4  ;;  %v566_v3 = vld [vmem:[#allocation7 + $0x1e0] sm:$0xff]  ;;  %v565_v4 = vld [vmem:[#allocation7 + $0x1d8] sm:$0xff] }
  0x81   :  { %447 = vmatprep.mubr.f32.mxu1 %v99_v5  ;;  %582 = vmatprep.subr.mxu0 %v537_v6  ;;  %v564_v5 = vld [vmem:[#allocation7 + $0x1d0] sm:$0xff]  ;;  %v563_v6 = vld [vmem:[#allocation7 + $0x1c8] sm:$0xff] }
  0x82   :  { %583 = vmatpush1.msra.mxu0 %v536_v7  ;;  %v562_v7 = vld [vmem:[#allocation7 + $0x1c0] sm:$0xff] }
  0x83   :  { %335 = vmatmul.mubr.f32.gmra.mxu0 %v96_v8  ;;  %584 = vmatprep.subr.mxu0 %v535_v12  ;;  %v561_v8 = vld [vmem:[#allocation7 + $0x1b8] sm:$0xff] }
  0x84   :  { %448 = vmatmul.mubr.f32.gmra.mxu1 %v98_v9  ;;  %340 = vmatprep.mubr.f32.mxu0 %v101_v10  ;;  %v560_v9 = vld [vmem:[#allocation7 + $0x1b0] sm:$0xff]  ;;  %v559_v10 = vld [vmem:[#allocation7 + $0x1a8] sm:$0xff]  ;;  %v557_v12 = vld [vmem:[#allocation7 + $0x198] sm:$0xff] }
  0x85   :  { %453 = vmatprep.mubr.f32.mxu1 %v103_v11  ;;  %585 = vmatpush1.msra.mxu0 %v534_v13  ;;  %v558_v11 = vld [vmem:[#allocation7 + $0x1a0] sm:$0xff]  ;;  %v556_v13 = vld [vmem:[#allocation7 + $0x190] sm:$0xff] }
  0x86   :  { %586 = vmatprep.subr.mxu0 %v533_v18  ;;  %v551_v18 = vld [vmem:[#allocation7 + $0x168] sm:$0xff] }
  0x87   :  { %341 = vmatmul.mubr.f32.gmra.mxu0 %v100_v14  ;;  %v555_v14 = vld [vmem:[#allocation7 + $0x188] sm:$0xff] }
  0x88   :  { %454 = vmatmul.mubr.f32.gmra.mxu1 %v102_v15  ;;  %346 = vmatprep.mubr.f32.mxu0 %v105_v16  ;;  %v554_v15 = vld [vmem:[#allocation7 + $0x180] sm:$0xff]  ;;  %v553_v16 = vld [vmem:[#allocation7 + $0x178] sm:$0xff] }
  0x89   :  { %459 = vmatprep.mubr.f32.mxu1 %v107_v17  ;;  %587 = vmatpush1.msra.mxu0 %v532_v19  ;;  %v552_v17 = vld [vmem:[#allocation7 + $0x170] sm:$0xff]  ;;  %v550_v19 = vld [vmem:[#allocation7 + $0x160] sm:$0xff] }
  0x8a   :  { %588 = vmatprep.subr.mxu0 %v531_v24  ;;  %v545_v24 = vld [vmem:[#allocation7 + $0x138] sm:$0xff] }
  0x8b   :  { %347 = vmatmul.mubr.f32.gmra.mxu0 %v104_v20  ;;  %v549_v20 = vld [vmem:[#allocation7 + $0x158] sm:$0xff] }
  0x8c   :  { %460 = vmatmul.mubr.f32.gmra.mxu1 %v106_v21  ;;  %352 = vmatprep.mubr.f32.mxu0 %v109_v22  ;;  %v548_v21 = vld [vmem:[#allocation7 + $0x150] sm:$0xff]  ;;  %v547_v22 = vld [vmem:[#allocation7 + $0x148] sm:$0xff] }
  0x8d   :  { %465 = vmatprep.mubr.f32.mxu1 %v111_v23  ;;  %589 = vmatpush1.msra.mxu0 %v530_v25  ;;  %v546_v23 = vld [vmem:[#allocation7 + $0x140] sm:$0xff]  ;;  %v544_v25 = vld [vmem:[#allocation7 + $0x130] sm:$0xff] }
  0x8e   :  { %590 = vmatprep.subr.mxu0 %v529_v30  ;;  %v539_v30 = vld [vmem:[#allocation7 + $0x108] sm:$0xff] }
  0x8f   :  { %353 = vmatmul.mubr.f32.gmra.mxu0 %v108_v26  ;;  %v543_v26 = vld [vmem:[#allocation7 + $0x128] sm:$0xff] }
  0x90   :  { %466 = vmatmul.mubr.f32.gmra.mxu1 %v110_v27  ;;  %358 = vmatprep.mubr.f32.mxu0 %v113_v28  ;;  %v542_v27 = vld [vmem:[#allocation7 + $0x120] sm:$0xff]  ;;  %v541_v28 = vld [vmem:[#allocation7 + $0x118] sm:$0xff] }
  0x91   :  { %471 = vmatprep.mubr.f32.mxu1 %v115_v29  ;;  %591 = vmatpush1.msra.mxu0 %v528_v31  ;;  %v540_v29 = vld [vmem:[#allocation7 + $0x110] sm:$0xff]  ;;  %v538_v31 = vld [vmem:[#allocation7 + $0x100] sm:$0xff] }
  0x92   :  { %592 = vmatprep.subr.mxu0 %v527_v36  ;;  %v740_v36 = vld [vmem:[#allocation9 + $0xe8] sm:$0xff] }
  0x93   :  { %359 = vmatmul.mubr.f32.gmra.mxu0 %v112_v32  ;;  %v742_v32 = vld [vmem:[#allocation9 + $0xf8] sm:$0xff] }
  0x94   :  { %472 = vmatmul.mubr.f32.gmra.mxu1 %v114_v33  ;;  %364 = vmatprep.mubr.f32.mxu0 %v117_v34  ;;  %v726_v33 = vld [vmem:[#allocation9 + $0x78] sm:$0xff]  ;;  %v741_v34 = vld [vmem:[#allocation9 + $0xf0] sm:$0xff] }
  0x95   :  { %477 = vmatprep.mubr.f32.mxu1 %v119_v35  ;;  %593 = vmatpush1.msra.mxu0 %v526_v37  ;;  %v725_v35 = vld [vmem:[#allocation9 + $0x70] sm:$0xff]  ;;  %v724_v37 = vld [vmem:[#allocation9 + $0x68] sm:$0xff] }
  0x96   :  { %594 = vmatprep.subr.mxu0 %v525_v42  ;;  %879 = vmatprep.subr.mxu1 %v742_v32  ;;  %v737_v42 = vld [vmem:[#allocation9 + $0xd0] sm:$0xff] }
  0x97   :  { %365 = vmatmul.mubr.f32.gmra.mxu0 %v116_v38  ;;  %880 = vmatpush3.msra.mxu1 %v726_v33  ;;  %v739_v38 = vld [vmem:[#allocation9 + $0xe0] sm:$0xff] }
  0x98   :  { %478 = vmatmul.mubr.f32.gmra.mxu1 %v118_v39  ;;  %370 = vmatprep.mubr.f32.mxu0 %v121_v40  ;;  %v723_v39 = vld [vmem:[#allocation9 + $0x60] sm:$0xff]  ;;  %v738_v40 = vld [vmem:[#allocation9 + $0xd8] sm:$0xff] }
  0x99   :  { %483 = vmatprep.mubr.f32.mxu1 %v123_v41  ;;  %595 = vmatpush1.msra.mxu0 %v524_v43  ;;  %v722_v41 = vld [vmem:[#allocation9 + $0x58] sm:$0xff]  ;;  %v721_v43 = vld [vmem:[#allocation9 + $0x50] sm:$0xff] }
  0x9a   :  { %596 = vmatprep.subr.mxu0 %v523_v46  ;;  %881 = vmatprep.subr.mxu1 %v741_v34  ;;  %v735_v46 = vld [vmem:[#allocation9 + $0xc0] sm:$0xff] }
  0x9b   :  { %371 = vmatmul.mubr.f32.gmra.mxu0 %v120_v44  ;;  %882 = vmatpush3.msra.mxu1 %v725_v35  ;;  %v736_v44 = vld [vmem:[#allocation9 + $0xc8] sm:$0xff] }
  0x9c   :  { %484 = vmatmul.mubr.f32.gmra.mxu1 %v122_v45  ;;  %597 = vmatpush1.msra.mxu0 %v522_v47  ;;  %v720_v45 = vld [vmem:[#allocation9 + $0x48] sm:$0xff]  ;;  %v719_v47 = vld [vmem:[#allocation9 + $0x40] sm:$0xff] }
  0x9d   :  { %598 = vmatprep.subr.mxu0 %v521_v48  ;;  %883 = vmatprep.subr.mxu1 %v740_v36  ;;  %v734_v48 = vld [vmem:[#allocation9 + $0xb8] sm:$0xff] }
  0x9e   :  { %599 = vmatpush1.msra.mxu0 %v520_v49  ;;  %884 = vmatpush3.msra.mxu1 %v724_v37  ;;  %v718_v49 = vld [vmem:[#allocation9 + $0x38] sm:$0xff] }
  0x9f   :  { %600 = vmatprep.subr.mxu0 %v519_v50  ;;  %885 = vmatprep.subr.mxu1 %v739_v38  ;;  %v733_v50 = vld [vmem:[#allocation9 + $0xb0] sm:$0xff] }
  0xa0   :  { %601 = vmatpush1.msra.mxu0 %v518_v51  ;;  %886 = vmatpush3.msra.mxu1 %v723_v39  ;;  %v717_v51 = vld [vmem:[#allocation9 + $0x30] sm:$0xff] }
  0xa1   :  { %602 = vmatprep.subr.mxu0 %v517_v52  ;;  %887 = vmatprep.subr.mxu1 %v738_v40  ;;  %v732_v52 = vld [vmem:[#allocation9 + $0xa8] sm:$0xff] }
  0xa2   :  { %603 = vmatpush1.msra.mxu0 %v516_v53  ;;  %888 = vmatpush3.msra.mxu1 %v722_v41  ;;  %v716_v53 = vld [vmem:[#allocation9 + $0x28] sm:$0xff] }
  0xa3   :  { %604 = vmatprep.subr.mxu0 %v515_v54  ;;  %889 = vmatprep.subr.mxu1 %v737_v42  ;;  %v731_v54 = vld [vmem:[#allocation9 + $0xa0] sm:$0xff] }
  0xa4   :  { %605 = vmatpush1.msra.mxu0 %v514_v55  ;;  %890 = vmatpush3.msra.mxu1 %v721_v43  ;;  %v715_v55 = vld [vmem:[#allocation9 + $0x20] sm:$0xff] }
  0xa5   :  { %606 = vmatprep.subr.mxu0 %v513_v56  ;;  %891 = vmatprep.subr.mxu1 %v736_v44  ;;  %v730_v56 = vld [vmem:[#allocation9 + $0x98] sm:$0xff] }
  0xa6   :  { %607 = vmatpush1.msra.mxu0 %v512_v57  ;;  %892 = vmatpush3.msra.mxu1 %v720_v45  ;;  %v254_v57 = vlaneseq }
  0xa7   :  { %608 = vmatprep.subr.mxu0 %v511_v58  ;;  %893 = vmatprep.subr.mxu1 %v735_v46 }
  0xa8   :  { %609 = vmatpush1.msra.mxu0 %v510_v59  ;;  %894 = vmatpush3.msra.mxu1 %v719_v47  ;;  %v1118_v58 = vshrl.u32 %v254_v57, 7 }
  0xa9   :  { %610 = vmatprep.subr.mxu0 %v509_v60  ;;  %895 = vmatprep.subr.mxu1 %v734_v48  ;;  %v252_v60 = vld [vmem:[#allocation6] sm:$0x3] }
  0xaa   :  { %611 = vmatpush1.msra.mxu0 %v508_v61  ;;  %896 = vmatpush3.msra.mxu1 %v718_v49  ;;  %v256_v59 = vsub.s32 0, %v1118_v58  ;;  %v260_v61 = vsub.s32 1, %v1118_v58 }
  0xab   :  { %612 = vmatprep.subr.mxu0 %v507_v62  ;;  %897 = vmatprep.subr.mxu1 %v733_v50 }
  0xac   :  { %613 = vmatpush1.msra.mxu0 %v506_v63  ;;  %898 = vmatpush3.msra.mxu1 %v717_v51  ;;  %v1124_v62 = vrot.slane %v252_v60, %v256_v59  ;;  %v1128_v63 = vrot.slane %v252_v60, %v260_v61 }
  0xad   :  { %614 = vmatprep.subr.mxu0 %v569_v0  ;;  %899 = vmatprep.subr.mxu1 %v732_v52 }
  0xae   :  { %615 = vmatpush2.msra.mxu0 %v568_v1  ;;  %900 = vmatpush3.msra.mxu1 %v716_v53 }
  0xaf   :  { %616 = vmatprep.subr.mxu0 %v567_v2  ;;  %901 = vmatprep.subr.mxu1 %v731_v54 }
  0xb0   :  { %617 = vmatpush2.msra.mxu0 %v566_v3  ;;  %902 = vmatpush3.msra.mxu1 %v715_v55 }
  0xb1   :  { %618 = vmatprep.subr.mxu0 %v565_v4  ;;  %903 = vmatprep.subr.mxu1 %v730_v56 }
  0xb2   :  { %619 = vmatpush2.msra.mxu0 %v564_v5 }
  0xb3   :  { %620 = vmatprep.subr.mxu0 %v563_v6 }
  0xb4   :  { %621 = vmatpush2.msra.mxu0 %v562_v7 }
  0xb5   :  { %622 = vmatprep.subr.mxu0 %v561_v8 }
  0xb6   :  { %623 = vmatpush2.msra.mxu0 %v560_v9 }
  0xb7   :  { %624 = vmatprep.subr.mxu0 %v559_v10 }
  0xb8   :  { %625 = vmatpush2.msra.mxu0 %v558_v11 }
  0xb9   :  { %626 = vmatprep.subr.mxu0 %v557_v12 }
  0xba   :  { %627 = vmatpush2.msra.mxu0 %v556_v13 }
  0xbb   :  { %628 = vmatprep.subr.mxu0 %v555_v14 }
  0xbc   :  { %629 = vmatpush2.msra.mxu0 %v554_v15 }
  0xbd   :  { %630 = vmatprep.subr.mxu0 %v553_v16 }
  0xbe   :  { %631 = vmatpush2.msra.mxu0 %v552_v17 }
  0xbf   :  { %632 = vmatprep.subr.mxu0 %v551_v18 }
  0xc0   :  { %633 = vmatpush2.msra.mxu0 %v550_v19 }
  0xc1   :  { %634 = vmatprep.subr.mxu0 %v549_v20 }
  0xc2   :  { %635 = vmatpush2.msra.mxu0 %v548_v21 }
  0xc3   :  { %636 = vmatprep.subr.mxu0 %v547_v22 }
  0xc4   :  { %637 = vmatpush2.msra.mxu0 %v546_v23 }
  0xc5   :  { %638 = vmatprep.subr.mxu0 %v545_v24 }
  0xc6   :  { %639 = vmatpush2.msra.mxu0 %v544_v25 }
  0xc7   :  { %640 = vmatprep.subr.mxu0 %v543_v26 }
  0xc8   :  { %641 = vmatpush2.msra.mxu0 %v542_v27 }
  0xc9   :  { %642 = vmatprep.subr.mxu0 %v541_v28 }
  0xca   :  { %643 = vmatpush2.msra.mxu0 %v540_v29 }
  0xcb   :  { %644 = vmatprep.subr.mxu0 %v539_v30 }
  0xcc   :  { %645 = vmatpush2.msra.mxu0 %v538_v31 }
 0x13f   :  { %v330_v0 = vpop.f32.mrf.mxu0 }
 0x140   :  { %v443_v1 = vpop.f32.mrf.mxu1  ;;  %v331_v2 = vadd.f32 %v330_v0, %v1124_v62 }
 0x141   :  { %v332_v3 = vpop.f32.mrf.mxu0 }
 0x142   :  { %v445_v4 = vpop.f32.mrf.mxu1  ;;  %v333_v5 = vadd.f32 %v332_v3, %v1128_v63  ;;  %v444_v6 = vadd.f32 %v443_v1, %v331_v2 }
 0x143   :  { %v336_v7 = vpop.f32.mrf.mxu0 }
 0x144   :  { %v449_v8 = vpop.f32.mrf.mxu1  ;;  %v446_v9 = vadd.f32 %v445_v4, %v333_v5  ;;  %v337_v10 = vadd.f32 %v336_v7, %v1124_v62  ;;  %v490_v15 = vmax.f32 %v444_v6, 0.0 }
 0x145   :  { %v338_v11 = vpop.f32.mrf.mxu0 }
 0x146   :  { %v451_v12 = vpop.f32.mrf.mxu1  ;;  %v491_v13 = vmax.f32 %v446_v9, 0.0  ;;  %v339_v14 = vadd.f32 %v338_v11, %v1128_v63  ;;  %v450_v16 = vadd.f32 %v449_v8, %v337_v10 }
 0x147   :  { %v342_v17 = vpop.f32.mrf.mxu0 }
 0x148   :  { %v455_v18 = vpop.f32.mrf.mxu1  ;;  %v452_v19 = vadd.f32 %v451_v12, %v339_v14  ;;  %v343_v20 = vadd.f32 %v342_v17, %v1124_v62  ;;  %646 = vmatprep.mubr.f32.mxu0 %v491_v13  ;;  %v492_v25 = vmax.f32 %v450_v16, 0.0 }
 0x149   :  { %v344_v21 = vpop.f32.mrf.mxu0  ;;  %647 = vmatmul.mubr.f32.vlgmr.msra.gmra.mxu0 %v490_v15 }
 0x14a   :  { %v457_v22 = vpop.f32.mrf.mxu1  ;;  %v493_v23 = vmax.f32 %v452_v19, 0.0  ;;  %v345_v24 = vadd.f32 %v344_v21, %v1128_v63  ;;  %v456_v26 = vadd.f32 %v455_v18, %v343_v20  ;;  %v714_v21 = vld [vmem:[#allocation9 + $0x18] sm:$0xff] }
 0x14b   :  { %v348_v27 = vpop.f32.mrf.mxu0  ;;  %904 = vmatpush3.msra.mxu1 %v714_v21 }
 0x14c   :  { %v461_v28 = vpop.f32.mrf.mxu1  ;;  %v458_v29 = vadd.f32 %v457_v22, %v345_v24  ;;  %v349_v30 = vadd.f32 %v348_v27, %v1124_v62  ;;  %652 = vmatprep.mubr.f32.mxu0 %v493_v23  ;;  %v494_v35 = vmax.f32 %v456_v26, 0.0  ;;  %v729_v22 = vld [vmem:[#allocation9 + $0x90] sm:$0xff]  ;;  %v728_v23 = vld [vmem:[#allocation9 + $0x88] sm:$0xff]  ;;  %v570_v26 = vld [vmem:[%s1184_s4] sm:$0x3] }
 0x14d   :  { %v350_v31 = vpop.f32.mrf.mxu0  ;;  %653 = vmatmul.mubr.f32.gmra.mxu0 %v492_v25  ;;  %905 = vmatprep.subr.mxu1 %v729_v22  ;;  %v712_v24 = vld [vmem:[#allocation9 + $0x8] sm:$0xff]  ;;  %v711_v25 = vld [vmem:[#allocation9] sm:$0xff]  ;;  %v575_v27 = vrot.slane %v570_v26, %v256_v59 }
 0x14e   :  { %v463_v32 = vpop.f32.mrf.mxu1  ;;  %v495_v33 = vmax.f32 %v458_v29, 0.0  ;;  %v351_v34 = vadd.f32 %v350_v31, %v1128_v63  ;;  %v462_v36 = vadd.f32 %v461_v28, %v349_v30  ;;  %v579_v28 = vrot.slane %v570_v26, %v260_v61 }
 0x14f   :  { %v354_v37 = vpop.f32.mrf.mxu0 }
 0x150   :  { %v467_v38 = vpop.f32.mrf.mxu1  ;;  %v464_v39 = vadd.f32 %v463_v32, %v351_v34  ;;  %v355_v40 = vadd.f32 %v354_v37, %v1124_v62  ;;  %658 = vmatprep.mubr.f32.mxu0 %v495_v33  ;;  %v496_v45 = vmax.f32 %v462_v36, 0.0 }
 0x151   :  { %v356_v41 = vpop.f32.mrf.mxu0  ;;  %659 = vmatmul.mubr.f32.gmra.mxu0 %v494_v35 }
 0x152   :  { %v469_v42 = vpop.f32.mrf.mxu1  ;;  %v497_v43 = vmax.f32 %v464_v39, 0.0  ;;  %v357_v44 = vadd.f32 %v356_v41, %v1128_v63  ;;  %v468_v46 = vadd.f32 %v467_v38, %v355_v40 }
 0x153   :  { %v360_v47 = vpop.f32.mrf.mxu0 }
 0x154   :  { %v473_v48 = vpop.f32.mrf.mxu1  ;;  %v470_v49 = vadd.f32 %v469_v42, %v357_v44  ;;  %v361_v50 = vadd.f32 %v360_v47, %v1124_v62  ;;  %664 = vmatprep.mubr.f32.mxu0 %v497_v43  ;;  %v498_v55 = vmax.f32 %v468_v46, 0.0 }
 0x155   :  { %v362_v51 = vpop.f32.mrf.mxu0  ;;  %665 = vmatmul.mubr.f32.gmra.mxu0 %v496_v45 }
 0x156   :  { %v475_v52 = vpop.f32.mrf.mxu1  ;;  %v499_v53 = vmax.f32 %v470_v49, 0.0  ;;  %v363_v54 = vadd.f32 %v362_v51, %v1128_v63  ;;  %v474_v56 = vadd.f32 %v473_v48, %v361_v50 }
 0x157   :  { %v366_v57 = vpop.f32.mrf.mxu0 }
 0x158   :  { %v479_v60 = vpop.f32.mrf.mxu1  ;;  %v476_v0 = vadd.f32 %v475_v52, %v363_v54  ;;  %v367_v1 = vadd.f32 %v366_v57, %v1124_v62  ;;  %670 = vmatprep.mubr.f32.mxu0 %v499_v53  ;;  %v500_v6 = vmax.f32 %v474_v56, 0.0 }
 0x159   :  { %v368_v2 = vpop.f32.mrf.mxu0  ;;  %671 = vmatmul.mubr.f32.gmra.mxu0 %v498_v55 }
 0x15a   :  { %v481_v3 = vpop.f32.mrf.mxu1  ;;  %v501_v4 = vmax.f32 %v476_v0, 0.0  ;;  %v369_v5 = vadd.f32 %v368_v2, %v1128_v63  ;;  %v480_v7 = vadd.f32 %v479_v60, %v367_v1 }
 0x15b   :  { %v372_v8 = vpop.f32.mrf.mxu0 }
 0x15c   :  { %v485_v9 = vpop.f32.mrf.mxu1  ;;  %v482_v10 = vadd.f32 %v481_v3, %v369_v5  ;;  %v373_v11 = vadd.f32 %v372_v8, %v1124_v62  ;;  %676 = vmatprep.mubr.f32.mxu0 %v501_v4  ;;  %v502_v15 = vmax.f32 %v480_v7, 0.0  ;;  %v713_v62 = vld [vmem:[#allocation9 + $0x10] sm:$0xff] }
 0x15d   :  { %v374_v12 = vpop.f32.mrf.mxu0  ;;  %677 = vmatmul.mubr.f32.gmra.mxu0 %v500_v6  ;;  %906 = vmatpush3.msra.mxu1 %v713_v62 }
 0x15e   :  { %v503_v13 = vmax.f32 %v482_v10, 0.0  ;;  %v375_v14 = vadd.f32 %v374_v12, %v1128_v63  ;;  %v486_v16 = vadd.f32 %v485_v9, %v373_v11  ;;  %v487_v17 = vpop.f32.mrf.mxu1  ;;  %907 = vmatprep.subr.mxu1 %v728_v23  ;;  %v727_v63 = vld [vmem:[#allocation9 + $0x80] sm:$0xff] }
 0x15f   :  { %908 = vmatpush3.msra.mxu1 %v712_v24 }
 0x160   :  { %v488_v18 = vadd.f32 %v487_v17, %v375_v14  ;;  %682 = vmatprep.mubr.f32.mxu0 %v503_v13  ;;  %v504_v20 = vmax.f32 %v486_v16, 0.0  ;;  %909 = vmatprep.subr.mxu1 %v727_v63  ;;  %v878_v16 = vld [vmem:[%s1186_s6] ss:$0 sm:$0xff] }
 0x161   :  { %683 = vmatmul.mubr.f32.gmra.mxu0 %v502_v15  ;;  %910 = vmatpush3.msra.mxu1 %v711_v25 }
 0x162   :  { %v505_v19 = vmax.f32 %v488_v18, 0.0 }
 0x164   :  { %688 = vmatprep.mubr.f32.mxu0 %v505_v19 }
 0x165   :  { %689 = vmatmul.mubr.f32.gmra.mxu0 %v504_v20 }
 0x209   :  { %v648_v29 = vpop.f32.mrf.mxu0 }
 0x20a   :  { %v649_v30 = vadd.f32 %v648_v29, %v575_v27 }
 0x20b   :  { %v650_v31 = vpop.f32.mrf.mxu0 }
 0x20c   :  { %v651_v32 = vadd.f32 %v650_v31, %v579_v28  ;;  %v695_v35 = vmax.f32 %v649_v30, 0.0 }
 0x20d   :  { %v654_v33 = vpop.f32.mrf.mxu0 }
 0x20e   :  { %v696_v34 = vmax.f32 %v651_v32, 0.0  ;;  %v655_v36 = vadd.f32 %v654_v33, %v575_v27 }
 0x20f   :  { %v656_v37 = vpop.f32.mrf.mxu0 }
 0x210   :  { %v657_v38 = vadd.f32 %v656_v37, %v579_v28  ;;  %814 = vmatprep.mubr.f32.mxu1 %v696_v34  ;;  %v697_v41 = vmax.f32 %v655_v36, 0.0 }
 0x211   :  { %v660_v39 = vpop.f32.mrf.mxu0  ;;  %815 = vmatmul.mubr.f32.vlgmr.msra.gmra.mxu1 %v695_v35 }
 0x212   :  { %v698_v40 = vmax.f32 %v657_v38, 0.0  ;;  %v661_v42 = vadd.f32 %v660_v39, %v575_v27 }
 0x213   :  { %v662_v59 = vpop.f32.mrf.mxu0 }
 0x214   :  { %v663_v43 = vadd.f32 %v662_v59, %v579_v28  ;;  %819 = vmatprep.mubr.f32.mxu1 %v698_v40  ;;  %v699_v44 = vmax.f32 %v661_v42, 0.0 }
 0x215   :  { %v666_v58 = vpop.f32.mrf.mxu0  ;;  %820 = vmatmul.mubr.f32.gmra.mxu1 %v697_v41 }
 0x216   :  { %v700_v61 = vmax.f32 %v663_v43, 0.0  ;;  %v667_v45 = vadd.f32 %v666_v58, %v575_v27 }
 0x217   :  { %v668_v46 = vpop.f32.mrf.mxu0 }
 0x218   :  { %v669_v47 = vadd.f32 %v668_v46, %v579_v28  ;;  %824 = vmatprep.mubr.f32.mxu1 %v700_v61  ;;  %v701_v50 = vmax.f32 %v667_v45, 0.0 }
 0x219   :  { %v672_v48 = vpop.f32.mrf.mxu0  ;;  %825 = vmatmul.mubr.f32.gmra.mxu1 %v699_v44 }
 0x21a   :  { %v702_v49 = vmax.f32 %v669_v47, 0.0  ;;  %v673_v51 = vadd.f32 %v672_v48, %v575_v27 }
 0x21b   :  { %v674_v52 = vpop.f32.mrf.mxu0 }
 0x21c   :  { %v675_v53 = vadd.f32 %v674_v52, %v579_v28  ;;  %829 = vmatprep.mubr.f32.mxu1 %v702_v49  ;;  %v703_v56 = vmax.f32 %v673_v51, 0.0 }
 0x21d   :  { %v678_v54 = vpop.f32.mrf.mxu0  ;;  %830 = vmatmul.mubr.f32.gmra.mxu1 %v701_v50 }
 0x21e   :  { %v704_v55 = vmax.f32 %v675_v53, 0.0  ;;  %v679_v57 = vadd.f32 %v678_v54, %v575_v27 }
 0x21f   :  { %v680_v60 = vpop.f32.mrf.mxu0 }
 0x220   :  { %v681_v0 = vadd.f32 %v680_v60, %v579_v28  ;;  %834 = vmatprep.mubr.f32.mxu1 %v704_v55  ;;  %v705_v3 = vmax.f32 %v679_v57, 0.0 }
 0x221   :  { %v684_v1 = vpop.f32.mrf.mxu0  ;;  %835 = vmatmul.mubr.f32.gmra.mxu1 %v703_v56 }
 0x222   :  { %v706_v2 = vmax.f32 %v681_v0, 0.0  ;;  %v685_v4 = vadd.f32 %v684_v1, %v575_v27 }
 0x223   :  { %v686_v5 = vpop.f32.mrf.mxu0 }
 0x224   :  { %v687_v6 = vadd.f32 %v686_v5, %v579_v28  ;;  %839 = vmatprep.mubr.f32.mxu1 %v706_v2  ;;  %v707_v9 = vmax.f32 %v685_v4, 0.0 }
 0x225   :  { %v690_v7 = vpop.f32.mrf.mxu0  ;;  %840 = vmatmul.mubr.f32.gmra.mxu1 %v705_v3 }
 0x226   :  { %v708_v8 = vmax.f32 %v687_v6, 0.0  ;;  %v691_v10 = vadd.f32 %v690_v7, %v575_v27 }
 0x227   :  { %v692_v11 = vpop.f32.mrf.mxu0 }
 0x228   :  { %v693_v12 = vadd.f32 %v692_v11, %v579_v28  ;;  %844 = vmatprep.mubr.f32.mxu1 %v708_v8  ;;  %v709_v14 = vmax.f32 %v691_v10, 0.0 }
 0x229   :  { %845 = vmatmul.mubr.f32.gmra.mxu1 %v707_v9 }
 0x22a   :  { %v710_v13 = vmax.f32 %v693_v12, 0.0 }
 0x22c   :  { %849 = vmatprep.mubr.f32.mxu1 %v710_v13 }
 0x22d   :  { %850 = vmatmul.mubr.f32.gmra.mxu1 %v709_v14 }
 0x2d1   :  { %v911_v15 = vpop.f32.mrf.mxu1 }
 0x2d3   :  { %v912_v17 = vpop.f32.mrf.mxu1 }
 0x2d4   :  { %v913_v18 = vadd.f32 %v912_v17, %v911_v15 }
 0x2d5   :  { %v914_v19 = vpop.f32.mrf.mxu1 }
 0x2d6   :  { %v817_v20 = vadd.f32 %v913_v18, %v878_v16 }
 0x2d7   :  { %v915_v21 = vpop.f32.mrf.mxu1 }
 0x2d8   :  { %v855_v22 = vmax.f32 %v817_v20, 0.0  ;;  %v916_v62 = vadd.f32 %v915_v21, %v914_v19 }
 0x2d9   :  { %v917_v23 = vpop.f32.mrf.mxu1 }
 0x2da   :  { %863 = vst [vmem:[%s1187_s7] sm:$0xff] %v855_v22  ;;  %v822_v24 = vadd.f32 %v916_v62, %v878_v16 }
 0x2db   :  { %v918_v63 = vpop.f32.mrf.mxu1 }
 0x2dc   :  { %v856_v25 = vmax.f32 %v822_v24, 0.0  ;;  %v919_v26 = vadd.f32 %v918_v63, %v917_v23 }
 0x2dd   :  { %v920_v27 = vpop.f32.mrf.mxu1 }
 0x2de   :  { %864 = vst [vmem:[%s1187_s7 + $0x8] sm:$0xff] %v856_v25  ;;  %v827_v28 = vadd.f32 %v919_v26, %v878_v16 }
 0x2df   :  { %v921_v29 = vpop.f32.mrf.mxu1 }
 0x2e0   :  { %v857_v30 = vmax.f32 %v827_v28, 0.0  ;;  %v922_v31 = vadd.f32 %v921_v29, %v920_v27 }
 0x2e1   :  { %v923_v32 = vpop.f32.mrf.mxu1 }
 0x2e2   :  { %865 = vst [vmem:[%s1187_s7 + $0x10] sm:$0xff] %v857_v30  ;;  %v832_v33 = vadd.f32 %v922_v31, %v878_v16 }
 0x2e3   :  { %v924_v34 = vpop.f32.mrf.mxu1 }
 0x2e4   :  { %v858_v35 = vmax.f32 %v832_v33, 0.0  ;;  %v925_v36 = vadd.f32 %v924_v34, %v923_v32 }
 0x2e5   :  { %v926_v37 = vpop.f32.mrf.mxu1 }
 0x2e6   :  { %866 = vst [vmem:[%s1187_s7 + $0x18] sm:$0xff] %v858_v35  ;;  %v837_v38 = vadd.f32 %v925_v36, %v878_v16 }
 0x2e7   :  { %v927_v39 = vpop.f32.mrf.mxu1 }
 0x2e8   :  { %v859_v40 = vmax.f32 %v837_v38, 0.0  ;;  %v928_v41 = vadd.f32 %v927_v39, %v926_v37 }
 0x2e9   :  { %v929_v42 = vpop.f32.mrf.mxu1 }
 0x2ea   :  { %867 = vst [vmem:[%s1187_s7 + $0x20] sm:$0xff] %v859_v40  ;;  %v842_v59 = vadd.f32 %v928_v41, %v878_v16 }
 0x2eb   :  { %v930_v43 = vpop.f32.mrf.mxu1 }
 0x2ec   :  { %v860_v58 = vmax.f32 %v842_v59, 0.0  ;;  %v931_v61 = vadd.f32 %v930_v43, %v929_v42 }
 0x2ed   :  { %v932_v44 = vpop.f32.mrf.mxu1 }
 0x2ee   :  { %868 = vst [vmem:[%s1187_s7 + $0x28] sm:$0xff] %v860_v58  ;;  %v847_v45 = vadd.f32 %v931_v61, %v878_v16 }
 0x2ef   :  { %v933_v46 = vpop.f32.mrf.mxu1 }
 0x2f0   :  { %v861_v47 = vmax.f32 %v847_v45, 0.0  ;;  %v934_v48 = vadd.f32 %v933_v46, %v932_v44 }
 0x2f2   :  { %869 = vst [vmem:[%s1187_s7 + $0x30] sm:$0xff] %v861_v47  ;;  %v852_v49 = vadd.f32 %v934_v48, %v878_v16 }
 0x2f4   :  { %v862_v50 = vmax.f32 %v852_v49, 0.0 }
 0x2f6   :  { %870 = vst [vmem:[%s1187_s7 + $0x38] sm:$0xff] %v862_v50 }
 0x2f7   :  { %875 = vsyncpa [#allocation3], 1 }
 0x2f8   :  { %876 = vsyncpa [#allocation5], 1 }
 0x2f9   :  { %877 = vsyncpa [#allocation8], 1 }

</bundles_post_ra>
